<compile_context>
chip_gen: v6e
topology: v6e:2x2x1
jax: 0.10.0
libtpu: 0.0.40
codegen_flags: <defaults>
</compile_context>

<pallas_src>
import functools

import jax
import jax.numpy as jnp
from jax import lax
from jax.experimental import pallas as pl
from jax.experimental.pallas import tpu as pltpu


def _round_up(x, m):
    return ((x + m - 1) // m) * m


def _choose_tile_n(c_out):
    # Prefer >= 2 channel tiles whenever c_out allows it so the "parallel" grid
    # axis can be split across v7x's two TensorCores; 256 keeps per-tile weight
    # DMAs large once c_out is big.
    return 256 if c_out > 256 else 128


def _vmem_limit_bytes():
    # Scale the scoped-VMEM budget with the part: ~48 MiB on v7x (64 MiB
    # physical), up to 96 MiB on v5e/v6e (128 MiB physical).
    try:
        cap = int(pltpu.get_tpu_info().vmem_capacity_bytes)
    except Exception:
        return 64 << 20
    return max(32 << 20, min(cap * 3 // 4, 96 << 20))


def _spiking_linear_kernel(x_ref, w_ref, params_ref, out_ref, y_ref, *,
                           n_real, n_rows, n_rows_pad, T, B, row_chunk,
                           tau, v_threshold, eps):
    # x_ref:     [n_rows_pad, c_in_pad]  (bf16 or f32)
    # w_ref:     [c_in_pad, tn]          (same dtype as x)
    # params_ref:[8, tn] f32  (row 0 = gamma, row 1 = beta)
    # out_ref:   [n_rows_pad, tn]        (bf16 spikes)
    # y_ref:     VMEM scratch [n_rows_pad, tn] f32 (staged Linear output)
    decay = 1.0 - 1.0 / tau
    tn = out_ref.shape[1]
    inv_n = 1.0 / n_real
    prec = lax.Precision.HIGHEST if x_ref.dtype == jnp.float32 else None

    # Static row-chunk schedule (all sizes multiples of 8).
    chunks = []
    r = 0
    while r < n_rows_pad:
        sz = min(row_chunk, n_rows_pad - r)
        chunks.append((r, sz))
        r += sz

    # ---- Pass 1: Linear on the MXU, streamed to VMEM scratch in row chunks so
    # the full result never has to live in vregs; accumulate per-channel sums
    # for BN as we go.  Bias omitted (cancelled by batch-statistic BN). ----
    col_sum = jnp.zeros((1, tn), jnp.float32)
    for r0, sz in chunks:
        yc = jnp.dot(x_ref[pl.ds(r0, sz), :], w_ref[...],
                     preferred_element_type=jnp.float32, precision=prec)
        y_ref[pl.ds(r0, sz), :] = yc
        col_sum = col_sum + jnp.sum(yc, axis=0, keepdims=True)
    mean = col_sum * inv_n

    # ---- Pass 2: two-pass (mean-subtracted) biased variance read back from the
    # scratch (avoids E[y^2]-E[y]^2 cancellation).  Padded rows hold exact zeros
    # (zero x rows, no bias) so each contributes mean^2; subtract that off. ----
    sq_sum = jnp.zeros((1, tn), jnp.float32)
    for r0, sz in chunks:
        d = y_ref[pl.ds(r0, sz), :] - mean
        sq_sum = sq_sum + jnp.sum(d * d, axis=0, keepdims=True)
    n_pad_rows = float(n_rows_pad - n_rows)
    var = jnp.maximum((sq_sum - n_pad_rows * (mean * mean)) * inv_n, 0.0)

    gamma = params_ref[0:1, :]
    beta = params_ref[1:2, :]
    scale = gamma * lax.rsqrt(var + eps)
    shift = beta - mean * scale
    # Hoist the (B, tn) broadcasts out of the LIF loop (JAX does not CSE them).
    scale_b = jnp.broadcast_to(scale, (B, tn))
    shift_b = jnp.broadcast_to(shift, (B, tn))

    # ---- Pass 3: LIF (tau=1.25, decay_input=False, hard reset to v_reset=0),
    # sequential over T.  Each timestep's spikes are stored straight to out_ref
    # (no in-register concat of all T steps).  heaviside(0)=1 -> use `>=`. ----
    v = jnp.zeros((B, tn), jnp.float32)
    for t in range(T):
        y_t = y_ref[pl.ds(t * B, B), :] * scale_b + shift_b
        v = v * decay + y_t                       # decay_input=False charge
        spike = v >= v_threshold
        v = jnp.where(spike, 0.0, v)              # hard reset to 0
        out_ref[pl.ds(t * B, B), :] = spike.astype(out_ref.dtype)

    # Padded tail rows are never touched by the LIF loop: define them as zeros
    # (they are stripped by the wrapper anyway).
    if n_rows_pad > n_rows:
        out_ref[pl.ds(n_rows, n_rows_pad - n_rows), :] = jnp.zeros(
            (n_rows_pad - n_rows, tn), out_ref.dtype)


def prepare_spiking_linear_params(w, b, gamma, beta, *, compute_dtype=jnp.bfloat16):
    """Pre-pad / pre-cast per-layer parameters ONCE (outside the per-call path).

    w: torch-layout [c_out, c_in] Linear weight.  The Linear bias `b` is exactly
    cancelled by the batch-statistic BatchNorm -> dropped from the kernel.
    Returns (w_p [c_in_pad, c_out_pad], params [8, c_out_pad], c_out).
    Use compute_dtype=jnp.float32 for closer bit-parity with the f32 reference
    (the kernel then runs the MXU at Precision.HIGHEST).
    """
    del b
    c_out, c_in = w.shape
    tn = _choose_tile_n(c_out)
    c_in_pad = _round_up(c_in, 128)
    c_out_pad = _round_up(c_out, tn)

    w_p = jnp.zeros((c_in_pad, c_out_pad), compute_dtype)
    w_p = w_p.at[:c_in, :c_out].set(w.T.astype(compute_dtype))

    params = jnp.zeros((8, c_out_pad), jnp.float32)          # one (8,128)-aligned slab
    params = params.at[0, :c_out].set(gamma.astype(jnp.float32))
    params = params.at[1, :c_out].set(beta.astype(jnp.float32))
    return w_p, params, c_out


def spiking_linear(x, w_p, params, c_out, *, tau=1.25, v_threshold=0.5,
                   eps=1e-5, out_dtype=jnp.bfloat16):
    """x: [T, B, c_in]; w_p/params from prepare_spiking_linear_params.

    Returns spikes [T, B, c_out] in out_dtype (values are exactly 0/1, so the
    default bf16 output is lossless and halves HBM writeback)."""
    T, B, c_in = x.shape
    c_in_pad, c_out_pad = w_p.shape
    compute_dtype = w_p.dtype
    tn = _choose_tile_n(c_out)
    assert c_out_pad % tn == 0 and c_in <= c_in_pad

    n_rows = T * B
    n_rows_pad = _round_up(n_rows, 8)     # single flat pad; no per-timestep padding

    x2d = x.reshape(n_rows, c_in).astype(compute_dtype)
    if n_rows_pad != n_rows or c_in_pad != c_in:
        x2d = jnp.pad(x2d, ((0, n_rows_pad - n_rows), (0, c_in_pad - c_in)))

    row_chunk = min(n_rows_pad, 256)
    kernel = functools.partial(
        _spiking_linear_kernel,
        n_real=float(n_rows), n_rows=n_rows, n_rows_pad=n_rows_pad,
        T=T, B=B, row_chunk=row_chunk,
        tau=tau, v_threshold=v_threshold, eps=eps)

    def call(single_buffer_x):
        x_spec_kwargs = {}
        if single_buffer_x:
            # x's index_map is constant across the channel grid, so
            # double-buffering it only wastes VMEM (matters most on v7x).
            x_spec_kwargs["pipeline_mode"] = pl.Buffered(1)
        grid_spec = pltpu.PrefetchScalarGridSpec(
            num_scalar_prefetch=0,
            grid=(c_out_pad // tn,),
            in_specs=[
                pl.BlockSpec((n_rows_pad, c_in_pad), lambda j: (0, 0),
                             **x_spec_kwargs),                     # full x rows
                pl.BlockSpec((c_in_pad, tn), lambda j: (0, j)),    # W column tile
                pl.BlockSpec((8, tn), lambda j: (0, j)),           # gamma/beta tile
            ],
            out_specs=pl.BlockSpec((n_rows_pad, tn), lambda j: (0, j)),
            scratch_shapes=[pltpu.VMEM((n_rows_pad, tn), jnp.float32)],
        )
        return pl.pallas_call(
            kernel,
            out_shape=jax.ShapeDtypeStruct((n_rows_pad, c_out_pad), out_dtype),
            grid_spec=grid_spec,
            compiler_params=pltpu.CompilerParams(
                dimension_semantics=("parallel",),   # channel tiles independent
                vmem_limit_bytes=_vmem_limit_bytes(),
            ),
        )(x2d, w_p, params)

    try:
        out2d = call(True)
    except Exception:
        # Fallback for JAX versions without BlockSpec(pipeline_mode=...).
        out2d = call(False)

    # Strip row/channel padding and restore [T, B, C_out].
    return out2d[:n_rows, :c_out].reshape(T, B, c_out)


if __name__ == "__main__":
    # Small shapes consistent with the module: T=8 timesteps, batch=2,
    # input_c=32, output_c=32.
    T, B, C_IN, C_OUT = 8, 2, 32, 32

    key = jax.random.PRNGKey(0)
    kx, kw, kb = jax.random.split(key, 3)

    x = jax.random.normal(kx, (T, B, C_IN), dtype=jnp.float32)

    # Deterministic parameter init (PyTorch Linear-style uniform bound).
    bound = 1.0 / jnp.sqrt(jnp.float32(C_IN))
    w = jax.random.uniform(kw, (C_OUT, C_IN), minval=-bound, maxval=bound,
                           dtype=jnp.float32)          # torch layout [out, in]
    b = jax.random.uniform(kb, (C_OUT,), minval=-bound, maxval=bound,
                           dtype=jnp.float32)
    gamma = jnp.ones((C_OUT,), jnp.float32)             # BN weight
    beta = jnp.zeros((C_OUT,), jnp.float32)             # BN bias

    # Parameters are padded/cast once, outside the per-call path.
    w_p, params, c_out = prepare_spiking_linear_params(w, b, gamma, beta)

    out = spiking_linear(x, w_p, params, c_out)
    jax.block_until_ready(out)

    assert out.shape == (T, B, C_OUT)
    print("KERNEL_OK")
</pallas_src>

<mosaic_0001>
module attributes {stable_mosaic.version = 11 : i64} {
  func.func @_spiking_linear_kernel(%arg0: i32, %arg1: memref<16x128xbf16, #tpu.memory_space<vmem>>, %arg2: memref<128x128xbf16, #tpu.memory_space<vmem>>, %arg3: memref<8x128xf32, #tpu.memory_space<vmem>>, %arg4: memref<16x128xbf16, #tpu.memory_space<vmem>>, %arg5: memref<16x128xf32, #tpu.memory_space<vmem>>) attributes {dimension_semantics = [#tpu.dimension_semantics<parallel>], iteration_bounds = array<i64: 1>, scalar_prefetch = 0 : i64, scratch_operands = 1 : i64, tpu.core_type = #tpu.core_type<tc>, window_params = [{pipeline_mode = #tpu.pipeline_mode<synchronous>, transform_indices = @transform_0, window_bounds = array<i64: 16, 128>}, {transform_indices = @transform_1, window_bounds = array<i64: 128, 128>}, {transform_indices = @transform_2, window_bounds = array<i64: 8, 128>}, {transform_indices = @transform_3, window_bounds = array<i64: 16, 128>}]} {
    %cst = arith.constant 0.000000e+00 : f32
    %0 = vector.broadcast %cst : f32 to vector<1x128xf32>
    %c0 = arith.constant 0 : index
    %c0_0 = arith.constant 0 : index
    %1 = vector.load %arg1[%c0, %c0_0] : memref<16x128xbf16, #tpu.memory_space<vmem>>, vector<16x128xbf16>
    %c0_1 = arith.constant 0 : index
    %c0_2 = arith.constant 0 : index
    %2 = vector.load %arg2[%c0_1, %c0_2] : memref<128x128xbf16, #tpu.memory_space<vmem>>, vector<128x128xbf16>
    %cst_3 = arith.constant dense<0.000000e+00> : vector<16x128xf32>
    %3 = tpu.matmul %1, %2, %cst_3 {dimension_numbers = #tpu.dot_dimension_numbers<[1], [0], [0], [1], [0, 0, 1, 1], [], []>} : vector<16x128xbf16>, vector<128x128xbf16>, vector<16x128xf32> -> vector<16x128xf32>
    %c0_4 = arith.constant 0 : index
    %c0_5 = arith.constant 0 : index
    %4 = vector.load %arg5[%c0_4, %c0_5] : memref<16x128xf32, #tpu.memory_space<vmem>>, vector<16x128xf32>
    tpu.vector_store %arg5[%c0_4, %c0_5], %3 {strides = array<i32>} : memref<16x128xf32, #tpu.memory_space<vmem>>, vector<16x128xf32>,
    %cst_6 = arith.constant dense<0.000000e+00> : vector<128xf32>
    %5 = vector.multi_reduction <add>, %3, %cst_6 [0] : vector<16x128xf32> to vector<128xf32>
    %6 = vector.shape_cast %5 : vector<128xf32> to vector<1x128xf32>
    %7 = arith.addf %0, %6 : vector<1x128xf32>
    %cst_7 = arith.constant 6.250000e-02 : f32
    %8 = vector.broadcast %cst_7 : f32 to vector<1x128xf32>
    %9 = arith.mulf %7, %8 : vector<1x128xf32>
    %cst_8 = arith.constant 0.000000e+00 : f32
    %10 = vector.broadcast %cst_8 : f32 to vector<1x128xf32>
    %c0_9 = arith.constant 0 : index
    %c0_10 = arith.constant 0 : index
    %11 = vector.load %arg5[%c0_9, %c0_10] : memref<16x128xf32, #tpu.memory_space<vmem>>, vector<16x128xf32>
    %12 = vector.broadcast %9 : vector<1x128xf32> to vector<16x128xf32>
    %13 = arith.subf %11, %12 : vector<16x128xf32>
    %14 = arith.mulf %13, %13 : vector<16x128xf32>
    %cst_11 = arith.constant dense<0.000000e+00> : vector<128xf32>
    %15 = vector.multi_reduction <add>, %14, %cst_11 [0] : vector<16x128xf32> to vector<128xf32>
    %16 = vector.shape_cast %15 : vector<128xf32> to vector<1x128xf32>
    %17 = arith.addf %10, %16 : vector<1x128xf32>
    %18 = arith.mulf %9, %9 : vector<1x128xf32>
    %cst_12 = arith.constant 0.000000e+00 : f32
    %19 = vector.broadcast %cst_12 : f32 to vector<1x128xf32>
    %20 = arith.mulf %19, %18 : vector<1x128xf32>
    %21 = arith.subf %17, %20 : vector<1x128xf32>
    %cst_13 = arith.constant 6.250000e-02 : f32
    %22 = vector.broadcast %cst_13 : f32 to vector<1x128xf32>
    %23 = arith.mulf %21, %22 : vector<1x128xf32>
    %cst_14 = arith.constant 0.000000e+00 : f32
    %24 = vector.broadcast %cst_14 : f32 to vector<1x128xf32>
    %25 = arith.maximumf %23, %24 : vector<1x128xf32>
    %c0_15 = arith.constant 0 : index
    %c0_16 = arith.constant 0 : index
    %26 = vector.load %arg3[%c0_15, %c0_16] : memref<8x128xf32, #tpu.memory_space<vmem>>, vector<1x128xf32>
    %c1 = arith.constant 1 : index
    %c0_17 = arith.constant 0 : index
    %27 = vector.load %arg3[%c1, %c0_17] : memref<8x128xf32, #tpu.memory_space<vmem>>, vector<1x128xf32>
    %cst_18 = arith.constant 9.99999974E-6 : f32
    %28 = vector.broadcast %cst_18 : f32 to vector<1x128xf32>
    %29 = arith.addf %25, %28 : vector<1x128xf32>
    %30 = math.rsqrt %29 : vector<1x128xf32>
    %31 = arith.mulf %26, %30 : vector<1x128xf32>
    %32 = arith.mulf %9, %31 : vector<1x128xf32>
    %33 = arith.subf %27, %32 : vector<1x128xf32>
    %34 = vector.shape_cast %31 : vector<1x128xf32> to vector<1x128xf32>
    %35 = vector.broadcast %34 : vector<1x128xf32> to vector<2x128xf32>
    %36 = vector.shape_cast %33 : vector<1x128xf32> to vector<1x128xf32>
    %37 = vector.broadcast %36 : vector<1x128xf32> to vector<2x128xf32>
    %cst_19 = arith.constant 0.000000e+00 : f32
    %38 = vector.broadcast %cst_19 : f32 to vector<2x128xf32>
    %c0_20 = arith.constant 0 : index
    %c0_21 = arith.constant 0 : index
    %39 = vector.load %arg5[%c0_20, %c0_21] : memref<16x128xf32, #tpu.memory_space<vmem>>, vector<2x128xf32>
    %40 = arith.mulf %39, %35 : vector<2x128xf32>
    %41 = arith.addf %40, %37 : vector<2x128xf32>
    %cst_22 = arith.constant 2.000000e-01 : f32
    %42 = vector.broadcast %cst_22 : f32 to vector<2x128xf32>
    %43 = arith.mulf %38, %42 : vector<2x128xf32>
    %44 = arith.addf %43, %41 : vector<2x128xf32>
    %cst_23 = arith.constant 5.000000e-01 : f32
    %45 = vector.broadcast %cst_23 : f32 to vector<2x128xf32>
    %46 = arith.cmpf oge, %44, %45 : vector<2x128xf32>
    %cst_24 = arith.constant 0.000000e+00 : f32
    %47 = vector.broadcast %cst_24 : f32 to vector<2x128xf32>
    %48 = arith.select %46, %47, %44 : vector<2x128xi1>, vector<2x128xf32>
    %49 = arith.extui %46 : vector<2x128xi1> to vector<2x128xi32>
    %50 = arith.sitofp %49 : vector<2x128xi32> to vector<2x128xf32>
    %51 = arith.truncf %50 : vector<2x128xf32> to vector<2x128xbf16>
    %c0_25 = arith.constant 0 : index
    %c0_26 = arith.constant 0 : index
    %52 = vector.load %arg4[%c0_25, %c0_26] : memref<16x128xbf16, #tpu.memory_space<vmem>>, vector<2x128xbf16>
    tpu.vector_store %arg4[%c0_25, %c0_26], %51 {strides = array<i32>} : memref<16x128xbf16, #tpu.memory_space<vmem>>, vector<2x128xbf16>,
    %c2 = arith.constant 2 : index
    %c0_27 = arith.constant 0 : index
    %53 = vector.load %arg5[%c2, %c0_27] : memref<16x128xf32, #tpu.memory_space<vmem>>, vector<2x128xf32>
    %54 = arith.mulf %53, %35 : vector<2x128xf32>
    %55 = arith.addf %54, %37 : vector<2x128xf32>
    %cst_28 = arith.constant 2.000000e-01 : f32
    %56 = vector.broadcast %cst_28 : f32 to vector<2x128xf32>
    %57 = arith.mulf %48, %56 : vector<2x128xf32>
    %58 = arith.addf %57, %55 : vector<2x128xf32>
    %cst_29 = arith.constant 5.000000e-01 : f32
    %59 = vector.broadcast %cst_29 : f32 to vector<2x128xf32>
    %60 = arith.cmpf oge, %58, %59 : vector<2x128xf32>
    %cst_30 = arith.constant 0.000000e+00 : f32
    %61 = vector.broadcast %cst_30 : f32 to vector<2x128xf32>
    %62 = arith.select %60, %61, %58 : vector<2x128xi1>, vector<2x128xf32>
    %63 = arith.extui %60 : vector<2x128xi1> to vector<2x128xi32>
    %64 = arith.sitofp %63 : vector<2x128xi32> to vector<2x128xf32>
    %65 = arith.truncf %64 : vector<2x128xf32> to vector<2x128xbf16>
    %c2_31 = arith.constant 2 : index
    %c0_32 = arith.constant 0 : index
    %66 = vector.load %arg4[%c2_31, %c0_32] : memref<16x128xbf16, #tpu.memory_space<vmem>>, vector<2x128xbf16>
    tpu.vector_store %arg4[%c2_31, %c0_32], %65 {strides = array<i32>} : memref<16x128xbf16, #tpu.memory_space<vmem>>, vector<2x128xbf16>,
    %c4 = arith.constant 4 : index
    %c0_33 = arith.constant 0 : index
    %67 = vector.load %arg5[%c4, %c0_33] : memref<16x128xf32, #tpu.memory_space<vmem>>, vector<2x128xf32>
    %68 = arith.mulf %67, %35 : vector<2x128xf32>
    %69 = arith.addf %68, %37 : vector<2x128xf32>
    %cst_34 = arith.constant 2.000000e-01 : f32
    %70 = vector.broadcast %cst_34 : f32 to vector<2x128xf32>
    %71 = arith.mulf %62, %70 : vector<2x128xf32>
    %72 = arith.addf %71, %69 : vector<2x128xf32>
    %cst_35 = arith.constant 5.000000e-01 : f32
    %73 = vector.broadcast %cst_35 : f32 to vector<2x128xf32>
    %74 = arith.cmpf oge, %72, %73 : vector<2x128xf32>
    %cst_36 = arith.constant 0.000000e+00 : f32
    %75 = vector.broadcast %cst_36 : f32 to vector<2x128xf32>
    %76 = arith.select %74, %75, %72 : vector<2x128xi1>, vector<2x128xf32>
    %77 = arith.extui %74 : vector<2x128xi1> to vector<2x128xi32>
    %78 = arith.sitofp %77 : vector<2x128xi32> to vector<2x128xf32>
    %79 = arith.truncf %78 : vector<2x128xf32> to vector<2x128xbf16>
    %c4_37 = arith.constant 4 : index
    %c0_38 = arith.constant 0 : index
    %80 = vector.load %arg4[%c4_37, %c0_38] : memref<16x128xbf16, #tpu.memory_space<vmem>>, vector<2x128xbf16>
    tpu.vector_store %arg4[%c4_37, %c0_38], %79 {strides = array<i32>} : memref<16x128xbf16, #tpu.memory_space<vmem>>, vector<2x128xbf16>,
    %c6 = arith.constant 6 : index
    %c0_39 = arith.constant 0 : index
    %81 = vector.load %arg5[%c6, %c0_39] : memref<16x128xf32, #tpu.memory_space<vmem>>, vector<2x128xf32>
    %82 = arith.mulf %81, %35 : vector<2x128xf32>
    %83 = arith.addf %82, %37 : vector<2x128xf32>
    %cst_40 = arith.constant 2.000000e-01 : f32
    %84 = vector.broadcast %cst_40 : f32 to vector<2x128xf32>
    %85 = arith.mulf %76, %84 : vector<2x128xf32>
    %86 = arith.addf %85, %83 : vector<2x128xf32>
    %cst_41 = arith.constant 5.000000e-01 : f32
    %87 = vector.broadcast %cst_41 : f32 to vector<2x128xf32>
    %88 = arith.cmpf oge, %86, %87 : vector<2x128xf32>
    %cst_42 = arith.constant 0.000000e+00 : f32
    %89 = vector.broadcast %cst_42 : f32 to vector<2x128xf32>
    %90 = arith.select %88, %89, %86 : vector<2x128xi1>, vector<2x128xf32>
    %91 = arith.extui %88 : vector<2x128xi1> to vector<2x128xi32>
    %92 = arith.sitofp %91 : vector<2x128xi32> to vector<2x128xf32>
    %93 = arith.truncf %92 : vector<2x128xf32> to vector<2x128xbf16>
    %c6_43 = arith.constant 6 : index
    %c0_44 = arith.constant 0 : index
    %94 = vector.load %arg4[%c6_43, %c0_44] : memref<16x128xbf16, #tpu.memory_space<vmem>>, vector<2x128xbf16>
    tpu.vector_store %arg4[%c6_43, %c0_44], %93 {strides = array<i32>} : memref<16x128xbf16, #tpu.memory_space<vmem>>, vector<2x128xbf16>,
    %c8 = arith.constant 8 : index
    %c0_45 = arith.constant 0 : index
    %95 = vector.load %arg5[%c8, %c0_45] : memref<16x128xf32, #tpu.memory_space<vmem>>, vector<2x128xf32>
    %96 = arith.mulf %95, %35 : vector<2x128xf32>
    %97 = arith.addf %96, %37 : vector<2x128xf32>
    %cst_46 = arith.constant 2.000000e-01 : f32
    %98 = vector.broadcast %cst_46 : f32 to vector<2x128xf32>
    %99 = arith.mulf %90, %98 : vector<2x128xf32>
    %100 = arith.addf %99, %97 : vector<2x128xf32>
    %cst_47 = arith.constant 5.000000e-01 : f32
    %101 = vector.broadcast %cst_47 : f32 to vector<2x128xf32>
    %102 = arith.cmpf oge, %100, %101 : vector<2x128xf32>
    %cst_48 = arith.constant 0.000000e+00 : f32
    %103 = vector.broadcast %cst_48 : f32 to vector<2x128xf32>
    %104 = arith.select %102, %103, %100 : vector<2x128xi1>, vector<2x128xf32>
    %105 = arith.extui %102 : vector<2x128xi1> to vector<2x128xi32>
    %106 = arith.sitofp %105 : vector<2x128xi32> to vector<2x128xf32>
    %107 = arith.truncf %106 : vector<2x128xf32> to vector<2x128xbf16>
    %c8_49 = arith.constant 8 : index
    %c0_50 = arith.constant 0 : index
    %108 = vector.load %arg4[%c8_49, %c0_50] : memref<16x128xbf16, #tpu.memory_space<vmem>>, vector<2x128xbf16>
    tpu.vector_store %arg4[%c8_49, %c0_50], %107 {strides = array<i32>} : memref<16x128xbf16, #tpu.memory_space<vmem>>, vector<2x128xbf16>,
    %c10 = arith.constant 10 : index
    %c0_51 = arith.constant 0 : index
    %109 = vector.load %arg5[%c10, %c0_51] : memref<16x128xf32, #tpu.memory_space<vmem>>, vector<2x128xf32>
    %110 = arith.mulf %109, %35 : vector<2x128xf32>
    %111 = arith.addf %110, %37 : vector<2x128xf32>
    %cst_52 = arith.constant 2.000000e-01 : f32
    %112 = vector.broadcast %cst_52 : f32 to vector<2x128xf32>
    %113 = arith.mulf %104, %112 : vector<2x128xf32>
    %114 = arith.addf %113, %111 : vector<2x128xf32>
    %cst_53 = arith.constant 5.000000e-01 : f32
    %115 = vector.broadcast %cst_53 : f32 to vector<2x128xf32>
    %116 = arith.cmpf oge, %114, %115 : vector<2x128xf32>
    %cst_54 = arith.constant 0.000000e+00 : f32
    %117 = vector.broadcast %cst_54 : f32 to vector<2x128xf32>
    %118 = arith.select %116, %117, %114 : vector<2x128xi1>, vector<2x128xf32>
    %119 = arith.extui %116 : vector<2x128xi1> to vector<2x128xi32>
    %120 = arith.sitofp %119 : vector<2x128xi32> to vector<2x128xf32>
    %121 = arith.truncf %120 : vector<2x128xf32> to vector<2x128xbf16>
    %c10_55 = arith.constant 10 : index
    %c0_56 = arith.constant 0 : index
    %122 = vector.load %arg4[%c10_55, %c0_56] : memref<16x128xbf16, #tpu.memory_space<vmem>>, vector<2x128xbf16>
    tpu.vector_store %arg4[%c10_55, %c0_56], %121 {strides = array<i32>} : memref<16x128xbf16, #tpu.memory_space<vmem>>, vector<2x128xbf16>,
    %c12 = arith.constant 12 : index
    %c0_57 = arith.constant 0 : index
    %123 = vector.load %arg5[%c12, %c0_57] : memref<16x128xf32, #tpu.memory_space<vmem>>, vector<2x128xf32>
    %124 = arith.mulf %123, %35 : vector<2x128xf32>
    %125 = arith.addf %124, %37 : vector<2x128xf32>
    %cst_58 = arith.constant 2.000000e-01 : f32
    %126 = vector.broadcast %cst_58 : f32 to vector<2x128xf32>
    %127 = arith.mulf %118, %126 : vector<2x128xf32>
    %128 = arith.addf %127, %125 : vector<2x128xf32>
    %cst_59 = arith.constant 5.000000e-01 : f32
    %129 = vector.broadcast %cst_59 : f32 to vector<2x128xf32>
    %130 = arith.cmpf oge, %128, %129 : vector<2x128xf32>
    %cst_60 = arith.constant 0.000000e+00 : f32
    %131 = vector.broadcast %cst_60 : f32 to vector<2x128xf32>
    %132 = arith.select %130, %131, %128 : vector<2x128xi1>, vector<2x128xf32>
    %133 = arith.extui %130 : vector<2x128xi1> to vector<2x128xi32>
    %134 = arith.sitofp %133 : vector<2x128xi32> to vector<2x128xf32>
    %135 = arith.truncf %134 : vector<2x128xf32> to vector<2x128xbf16>
    %c12_61 = arith.constant 12 : index
    %c0_62 = arith.constant 0 : index
    %136 = vector.load %arg4[%c12_61, %c0_62] : memref<16x128xbf16, #tpu.memory_space<vmem>>, vector<2x128xbf16>
    tpu.vector_store %arg4[%c12_61, %c0_62], %135 {strides = array<i32>} : memref<16x128xbf16, #tpu.memory_space<vmem>>, vector<2x128xbf16>,
    %c14 = arith.constant 14 : index
    %c0_63 = arith.constant 0 : index
    %137 = vector.load %arg5[%c14, %c0_63] : memref<16x128xf32, #tpu.memory_space<vmem>>, vector<2x128xf32>
    %138 = arith.mulf %137, %35 : vector<2x128xf32>
    %139 = arith.addf %138, %37 : vector<2x128xf32>
    %cst_64 = arith.constant 2.000000e-01 : f32
    %140 = vector.broadcast %cst_64 : f32 to vector<2x128xf32>
    %141 = arith.mulf %132, %140 : vector<2x128xf32>
    %142 = arith.addf %141, %139 : vector<2x128xf32>
    %cst_65 = arith.constant 5.000000e-01 : f32
    %143 = vector.broadcast %cst_65 : f32 to vector<2x128xf32>
    %144 = arith.cmpf oge, %142, %143 : vector<2x128xf32>
    %145 = arith.extui %144 : vector<2x128xi1> to vector<2x128xi32>
    %146 = arith.sitofp %145 : vector<2x128xi32> to vector<2x128xf32>
    %147 = arith.truncf %146 : vector<2x128xf32> to vector<2x128xbf16>
    %c14_66 = arith.constant 14 : index
    %c0_67 = arith.constant 0 : index
    %148 = vector.load %arg4[%c14_66, %c0_67] : memref<16x128xbf16, #tpu.memory_space<vmem>>, vector<2x128xbf16>
    tpu.vector_store %arg4[%c14_66, %c0_67], %147 {strides = array<i32>} : memref<16x128xbf16, #tpu.memory_space<vmem>>, vector<2x128xbf16>,
    return
  }
  func.func @transform_0(%arg0: i32) -> (i32, i32) {
    %c0_i32 = arith.constant 0 : i32
    %c0_i32_0 = arith.constant 0 : i32
    %c0_i32_1 = arith.constant 0 : i32
    return %c0_i32, %c0_i32_0 : i32, i32
  }
  func.func @transform_1(%arg0: i32) -> (i32, i32) {
    %c0_i32 = arith.constant 0 : i32
    %c0_i32_0 = arith.constant 0 : i32
    return %c0_i32, %arg0 : i32, i32
  }
  func.func @transform_2(%arg0: i32) -> (i32, i32) {
    %c0_i32 = arith.constant 0 : i32
    %c0_i32_0 = arith.constant 0 : i32
    return %c0_i32, %arg0 : i32, i32
  }
  func.func @transform_3(%arg0: i32) -> (i32, i32) {
    %c0_i32 = arith.constant 0 : i32
    %c0_i32_0 = arith.constant 0 : i32
    return %c0_i32, %arg0 : i32, i32
  }
}

module attributes {stable_mosaic.version = 11 : i64} {
  func.func @_spiking_linear_kernel(%arg0: i32, %arg1: memref<16x128xbf16, #tpu.memory_space<vmem>>, %arg2: memref<128x128xbf16, #tpu.memory_space<vmem>>, %arg3: memref<8x128xf32, #tpu.memory_space<vmem>>, %arg4: memref<16x128xbf16, #tpu.memory_space<vmem>>, %arg5: memref<16x128xf32, #tpu.memory_space<vmem>>) attributes {dimension_semantics = [#tpu.dimension_semantics<parallel>], iteration_bounds = array<i64: 1>, scalar_prefetch = 0 : i64, scratch_operands = 1 : i64, tpu.core_type = #tpu.core_type<tc>, window_params = [{pipeline_mode = #tpu.pipeline_mode<synchronous>, transform_indices = @transform_0, window_bounds = array<i64: 16, 128>}, {transform_indices = @transform_1, window_bounds = array<i64: 128, 128>}, {transform_indices = @transform_2, window_bounds = array<i64: 8, 128>}, {transform_indices = @transform_3, window_bounds = array<i64: 16, 128>}]} {
    %cst = arith.constant 0.000000e+00 : f32
    %0 = vector.broadcast %cst : f32 to vector<1x128xf32>
    %c0 = arith.constant 0 : index
    %c0_0 = arith.constant 0 : index
    %1 = vector.load %arg1[%c0, %c0_0] : memref<16x128xbf16, #tpu.memory_space<vmem>>, vector<16x128xbf16>
    %c0_1 = arith.constant 0 : index
    %c0_2 = arith.constant 0 : index
    %2 = vector.load %arg2[%c0_1, %c0_2] : memref<128x128xbf16, #tpu.memory_space<vmem>>, vector<128x128xbf16>
    %cst_3 = arith.constant dense<0.000000e+00> : vector<16x128xf32>
    %3 = tpu.matmul %1, %2, %cst_3 {dimension_numbers = #tpu.dot_dimension_numbers<[1], [0], [0], [1], [0, 0, 1, 1], [], []>} : vector<16x128xbf16>, vector<128x128xbf16>, vector<16x128xf32> -> vector<16x128xf32>
    %c0_4 = arith.constant 0 : index
    %c0_5 = arith.constant 0 : index
    %4 = vector.load %arg5[%c0_4, %c0_5] : memref<16x128xf32, #tpu.memory_space<vmem>>, vector<16x128xf32>
    tpu.vector_store %arg5[%c0_4, %c0_5], %3 {strides = array<i32>} : memref<16x128xf32, #tpu.memory_space<vmem>>, vector<16x128xf32>,
    %cst_6 = arith.constant dense<0.000000e+00> : vector<128xf32>
    %5 = vector.multi_reduction <add>, %3, %cst_6 [0] : vector<16x128xf32> to vector<128xf32>
    %6 = vector.shape_cast %5 : vector<128xf32> to vector<1x128xf32>
    %7 = arith.addf %0, %6 : vector<1x128xf32>
    %cst_7 = arith.constant 6.250000e-02 : f32
    %8 = vector.broadcast %cst_7 : f32 to vector<1x128xf32>
    %9 = arith.mulf %7, %8 : vector<1x128xf32>
    %cst_8 = arith.constant 0.000000e+00 : f32
    %10 = vector.broadcast %cst_8 : f32 to vector<1x128xf32>
    %c0_9 = arith.constant 0 : index
    %c0_10 = arith.constant 0 : index
    %11 = vector.load %arg5[%c0_9, %c0_10] : memref<16x128xf32, #tpu.memory_space<vmem>>, vector<16x128xf32>
    %12 = vector.broadcast %9 : vector<1x128xf32> to vector<16x128xf32>
    %13 = arith.subf %11, %12 : vector<16x128xf32>
    %14 = arith.mulf %13, %13 : vector<16x128xf32>
    %cst_11 = arith.constant dense<0.000000e+00> : vector<128xf32>
    %15 = vector.multi_reduction <add>, %14, %cst_11 [0] : vector<16x128xf32> to vector<128xf32>
    %16 = vector.shape_cast %15 : vector<128xf32> to vector<1x128xf32>
    %17 = arith.addf %10, %16 : vector<1x128xf32>
    %18 = arith.mulf %9, %9 : vector<1x128xf32>
    %cst_12 = arith.constant 0.000000e+00 : f32
    %19 = vector.broadcast %cst_12 : f32 to vector<1x128xf32>
    %20 = arith.mulf %19, %18 : vector<1x128xf32>
    %21 = arith.subf %17, %20 : vector<1x128xf32>
    %cst_13 = arith.constant 6.250000e-02 : f32
    %22 = vector.broadcast %cst_13 : f32 to vector<1x128xf32>
    %23 = arith.mulf %21, %22 : vector<1x128xf32>
    %cst_14 = arith.constant 0.000000e+00 : f32
    %24 = vector.broadcast %cst_14 : f32 to vector<1x128xf32>
    %25 = arith.maximumf %23, %24 : vector<1x128xf32>
    %c0_15 = arith.constant 0 : index
    %c0_16 = arith.constant 0 : index
    %26 = vector.load %arg3[%c0_15, %c0_16] : memref<8x128xf32, #tpu.memory_space<vmem>>, vector<1x128xf32>
    %c1 = arith.constant 1 : index
    %c0_17 = arith.constant 0 : index
    %27 = vector.load %arg3[%c1, %c0_17] : memref<8x128xf32, #tpu.memory_space<vmem>>, vector<1x128xf32>
    %cst_18 = arith.constant 9.99999974E-6 : f32
    %28 = vector.broadcast %cst_18 : f32 to vector<1x128xf32>
    %29 = arith.addf %25, %28 : vector<1x128xf32>
    %30 = math.rsqrt %29 : vector<1x128xf32>
    %31 = arith.mulf %26, %30 : vector<1x128xf32>
    %32 = arith.mulf %9, %31 : vector<1x128xf32>
    %33 = arith.subf %27, %32 : vector<1x128xf32>
    %34 = vector.shape_cast %31 : vector<1x128xf32> to vector<1x128xf32>
    %35 = vector.broadcast %34 : vector<1x128xf32> to vector<2x128xf32>
    %36 = vector.shape_cast %33 : vector<1x128xf32> to vector<1x128xf32>
    %37 = vector.broadcast %36 : vector<1x128xf32> to vector<2x128xf32>
    %cst_19 = arith.constant 0.000000e+00 : f32
    %38 = vector.broadcast %cst_19 : f32 to vector<2x128xf32>
    %c0_20 = arith.constant 0 : index
    %c0_21 = arith.constant 0 : index
    %39 = vector.load %arg5[%c0_20, %c0_21] : memref<16x128xf32, #tpu.memory_space<vmem>>, vector<2x128xf32>
    %40 = arith.mulf %39, %35 : vector<2x128xf32>
    %41 = arith.addf %40, %37 : vector<2x128xf32>
    %cst_22 = arith.constant 2.000000e-01 : f32
    %42 = vector.broadcast %cst_22 : f32 to vector<2x128xf32>
    %43 = arith.mulf %38, %42 : vector<2x128xf32>
    %44 = arith.addf %43, %41 : vector<2x128xf32>
    %cst_23 = arith.constant 5.000000e-01 : f32
    %45 = vector.broadcast %cst_23 : f32 to vector<2x128xf32>
    %46 = arith.cmpf oge, %44, %45 : vector<2x128xf32>
    %cst_24 = arith.constant 0.000000e+00 : f32
    %47 = vector.broadcast %cst_24 : f32 to vector<2x128xf32>
    %48 = arith.select %46, %47, %44 : vector<2x128xi1>, vector<2x128xf32>
    %49 = arith.extui %46 : vector<2x128xi1> to vector<2x128xi32>
    %50 = arith.sitofp %49 : vector<2x128xi32> to vector<2x128xf32>
    %51 = arith.truncf %50 : vector<2x128xf32> to vector<2x128xbf16>
    %c0_25 = arith.constant 0 : index
    %c0_26 = arith.constant 0 : index
    %52 = vector.load %arg4[%c0_25, %c0_26] : memref<16x128xbf16, #tpu.memory_space<vmem>>, vector<2x128xbf16>
    tpu.vector_store %arg4[%c0_25, %c0_26], %51 {strides = array<i32>} : memref<16x128xbf16, #tpu.memory_space<vmem>>, vector<2x128xbf16>,
    %c2 = arith.constant 2 : index
    %c0_27 = arith.constant 0 : index
    %53 = vector.load %arg5[%c2, %c0_27] : memref<16x128xf32, #tpu.memory_space<vmem>>, vector<2x128xf32>
    %54 = arith.mulf %53, %35 : vector<2x128xf32>
    %55 = arith.addf %54, %37 : vector<2x128xf32>
    %cst_28 = arith.constant 2.000000e-01 : f32
    %56 = vector.broadcast %cst_28 : f32 to vector<2x128xf32>
    %57 = arith.mulf %48, %56 : vector<2x128xf32>
    %58 = arith.addf %57, %55 : vector<2x128xf32>
    %cst_29 = arith.constant 5.000000e-01 : f32
    %59 = vector.broadcast %cst_29 : f32 to vector<2x128xf32>
    %60 = arith.cmpf oge, %58, %59 : vector<2x128xf32>
    %cst_30 = arith.constant 0.000000e+00 : f32
    %61 = vector.broadcast %cst_30 : f32 to vector<2x128xf32>
    %62 = arith.select %60, %61, %58 : vector<2x128xi1>, vector<2x128xf32>
    %63 = arith.extui %60 : vector<2x128xi1> to vector<2x128xi32>
    %64 = arith.sitofp %63 : vector<2x128xi32> to vector<2x128xf32>
    %65 = arith.truncf %64 : vector<2x128xf32> to vector<2x128xbf16>
    %c2_31 = arith.constant 2 : index
    %c0_32 = arith.constant 0 : index
    %66 = vector.load %arg4[%c2_31, %c0_32] : memref<16x128xbf16, #tpu.memory_space<vmem>>, vector<2x128xbf16>
    tpu.vector_store %arg4[%c2_31, %c0_32], %65 {strides = array<i32>} : memref<16x128xbf16, #tpu.memory_space<vmem>>, vector<2x128xbf16>,
    %c4 = arith.constant 4 : index
    %c0_33 = arith.constant 0 : index
    %67 = vector.load %arg5[%c4, %c0_33] : memref<16x128xf32, #tpu.memory_space<vmem>>, vector<2x128xf32>
    %68 = arith.mulf %67, %35 : vector<2x128xf32>
    %69 = arith.addf %68, %37 : vector<2x128xf32>
    %cst_34 = arith.constant 2.000000e-01 : f32
    %70 = vector.broadcast %cst_34 : f32 to vector<2x128xf32>
    %71 = arith.mulf %62, %70 : vector<2x128xf32>
    %72 = arith.addf %71, %69 : vector<2x128xf32>
    %cst_35 = arith.constant 5.000000e-01 : f32
    %73 = vector.broadcast %cst_35 : f32 to vector<2x128xf32>
    %74 = arith.cmpf oge, %72, %73 : vector<2x128xf32>
    %cst_36 = arith.constant 0.000000e+00 : f32
    %75 = vector.broadcast %cst_36 : f32 to vector<2x128xf32>
    %76 = arith.select %74, %75, %72 : vector<2x128xi1>, vector<2x128xf32>
    %77 = arith.extui %74 : vector<2x128xi1> to vector<2x128xi32>
    %78 = arith.sitofp %77 : vector<2x128xi32> to vector<2x128xf32>
    %79 = arith.truncf %78 : vector<2x128xf32> to vector<2x128xbf16>
    %c4_37 = arith.constant 4 : index
    %c0_38 = arith.constant 0 : index
    %80 = vector.load %arg4[%c4_37, %c0_38] : memref<16x128xbf16, #tpu.memory_space<vmem>>, vector<2x128xbf16>
    tpu.vector_store %arg4[%c4_37, %c0_38], %79 {strides = array<i32>} : memref<16x128xbf16, #tpu.memory_space<vmem>>, vector<2x128xbf16>,
    %c6 = arith.constant 6 : index
    %c0_39 = arith.constant 0 : index
    %81 = vector.load %arg5[%c6, %c0_39] : memref<16x128xf32, #tpu.memory_space<vmem>>, vector<2x128xf32>
    %82 = arith.mulf %81, %35 : vector<2x128xf32>
    %83 = arith.addf %82, %37 : vector<2x128xf32>
    %cst_40 = arith.constant 2.000000e-01 : f32
    %84 = vector.broadcast %cst_40 : f32 to vector<2x128xf32>
    %85 = arith.mulf %76, %84 : vector<2x128xf32>
    %86 = arith.addf %85, %83 : vector<2x128xf32>
    %cst_41 = arith.constant 5.000000e-01 : f32
    %87 = vector.broadcast %cst_41 : f32 to vector<2x128xf32>
    %88 = arith.cmpf oge, %86, %87 : vector<2x128xf32>
    %cst_42 = arith.constant 0.000000e+00 : f32
    %89 = vector.broadcast %cst_42 : f32 to vector<2x128xf32>
    %90 = arith.select %88, %89, %86 : vector<2x128xi1>, vector<2x128xf32>
    %91 = arith.extui %88 : vector<2x128xi1> to vector<2x128xi32>
    %92 = arith.sitofp %91 : vector<2x128xi32> to vector<2x128xf32>
    %93 = arith.truncf %92 : vector<2x128xf32> to vector<2x128xbf16>
    %c6_43 = arith.constant 6 : index
    %c0_44 = arith.constant 0 : index
    %94 = vector.load %arg4[%c6_43, %c0_44] : memref<16x128xbf16, #tpu.memory_space<vmem>>, vector<2x128xbf16>
    tpu.vector_store %arg4[%c6_43, %c0_44], %93 {strides = array<i32>} : memref<16x128xbf16, #tpu.memory_space<vmem>>, vector<2x128xbf16>,
    %c8 = arith.constant 8 : index
    %c0_45 = arith.constant 0 : index
    %95 = vector.load %arg5[%c8, %c0_45] : memref<16x128xf32, #tpu.memory_space<vmem>>, vector<2x128xf32>
    %96 = arith.mulf %95, %35 : vector<2x128xf32>
    %97 = arith.addf %96, %37 : vector<2x128xf32>
    %cst_46 = arith.constant 2.000000e-01 : f32
    %98 = vector.broadcast %cst_46 : f32 to vector<2x128xf32>
    %99 = arith.mulf %90, %98 : vector<2x128xf32>
    %100 = arith.addf %99, %97 : vector<2x128xf32>
    %cst_47 = arith.constant 5.000000e-01 : f32
    %101 = vector.broadcast %cst_47 : f32 to vector<2x128xf32>
    %102 = arith.cmpf oge, %100, %101 : vector<2x128xf32>
    %cst_48 = arith.constant 0.000000e+00 : f32
    %103 = vector.broadcast %cst_48 : f32 to vector<2x128xf32>
    %104 = arith.select %102, %103, %100 : vector<2x128xi1>, vector<2x128xf32>
    %105 = arith.extui %102 : vector<2x128xi1> to vector<2x128xi32>
    %106 = arith.sitofp %105 : vector<2x128xi32> to vector<2x128xf32>
    %107 = arith.truncf %106 : vector<2x128xf32> to vector<2x128xbf16>
    %c8_49 = arith.constant 8 : index
    %c0_50 = arith.constant 0 : index
    %108 = vector.load %arg4[%c8_49, %c0_50] : memref<16x128xbf16, #tpu.memory_space<vmem>>, vector<2x128xbf16>
    tpu.vector_store %arg4[%c8_49, %c0_50], %107 {strides = array<i32>} : memref<16x128xbf16, #tpu.memory_space<vmem>>, vector<2x128xbf16>,
    %c10 = arith.constant 10 : index
    %c0_51 = arith.constant 0 : index
    %109 = vector.load %arg5[%c10, %c0_51] : memref<16x128xf32, #tpu.memory_space<vmem>>, vector<2x128xf32>
    %110 = arith.mulf %109, %35 : vector<2x128xf32>
    %111 = arith.addf %110, %37 : vector<2x128xf32>
    %cst_52 = arith.constant 2.000000e-01 : f32
    %112 = vector.broadcast %cst_52 : f32 to vector<2x128xf32>
    %113 = arith.mulf %104, %112 : vector<2x128xf32>
    %114 = arith.addf %113, %111 : vector<2x128xf32>
    %cst_53 = arith.constant 5.000000e-01 : f32
    %115 = vector.broadcast %cst_53 : f32 to vector<2x128xf32>
    %116 = arith.cmpf oge, %114, %115 : vector<2x128xf32>
    %cst_54 = arith.constant 0.000000e+00 : f32
    %117 = vector.broadcast %cst_54 : f32 to vector<2x128xf32>
    %118 = arith.select %116, %117, %114 : vector<2x128xi1>, vector<2x128xf32>
    %119 = arith.extui %116 : vector<2x128xi1> to vector<2x128xi32>
    %120 = arith.sitofp %119 : vector<2x128xi32> to vector<2x128xf32>
    %121 = arith.truncf %120 : vector<2x128xf32> to vector<2x128xbf16>
    %c10_55 = arith.constant 10 : index
    %c0_56 = arith.constant 0 : index
    %122 = vector.load %arg4[%c10_55, %c0_56] : memref<16x128xbf16, #tpu.memory_space<vmem>>, vector<2x128xbf16>
    tpu.vector_store %arg4[%c10_55, %c0_56], %121 {strides = array<i32>} : memref<16x128xbf16, #tpu.memory_space<vmem>>, vector<2x128xbf16>,
    %c12 = arith.constant 12 : index
    %c0_57 = arith.constant 0 : index
    %123 = vector.load %arg5[%c12, %c0_57] : memref<16x128xf32, #tpu.memory_space<vmem>>, vector<2x128xf32>
    %124 = arith.mulf %123, %35 : vector<2x128xf32>
    %125 = arith.addf %124, %37 : vector<2x128xf32>
    %cst_58 = arith.constant 2.000000e-01 : f32
    %126 = vector.broadcast %cst_58 : f32 to vector<2x128xf32>
    %127 = arith.mulf %118, %126 : vector<2x128xf32>
    %128 = arith.addf %127, %125 : vector<2x128xf32>
    %cst_59 = arith.constant 5.000000e-01 : f32
    %129 = vector.broadcast %cst_59 : f32 to vector<2x128xf32>
    %130 = arith.cmpf oge, %128, %129 : vector<2x128xf32>
    %cst_60 = arith.constant 0.000000e+00 : f32
    %131 = vector.broadcast %cst_60 : f32 to vector<2x128xf32>
    %132 = arith.select %130, %131, %128 : vector<2x128xi1>, vector<2x128xf32>
    %133 = arith.extui %130 : vector<2x128xi1> to vector<2x128xi32>
    %134 = arith.sitofp %133 : vector<2x128xi32> to vector<2x128xf32>
    %135 = arith.truncf %134 : vector<2x128xf32> to vector<2x128xbf16>
    %c12_61 = arith.constant 12 : index
    %c0_62 = arith.constant 0 : index
    %136 = vector.load %arg4[%c12_61, %c0_62] : memref<16x128xbf16, #tpu.memory_space<vmem>>, vector<2x128xbf16>
    tpu.vector_store %arg4[%c12_61, %c0_62], %135 {strides = array<i32>} : memref<16x128xbf16, #tpu.memory_space<vmem>>, vector<2x128xbf16>,
    %c14 = arith.constant 14 : index
    %c0_63 = arith.constant 0 : index
    %137 = vector.load %arg5[%c14, %c0_63] : memref<16x128xf32, #tpu.memory_space<vmem>>, vector<2x128xf32>
    %138 = arith.mulf %137, %35 : vector<2x128xf32>
    %139 = arith.addf %138, %37 : vector<2x128xf32>
    %cst_64 = arith.constant 2.000000e-01 : f32
    %140 = vector.broadcast %cst_64 : f32 to vector<2x128xf32>
    %141 = arith.mulf %132, %140 : vector<2x128xf32>
    %142 = arith.addf %141, %139 : vector<2x128xf32>
    %cst_65 = arith.constant 5.000000e-01 : f32
    %143 = vector.broadcast %cst_65 : f32 to vector<2x128xf32>
    %144 = arith.cmpf oge, %142, %143 : vector<2x128xf32>
    %145 = arith.extui %144 : vector<2x128xi1> to vector<2x128xi32>
    %146 = arith.sitofp %145 : vector<2x128xi32> to vector<2x128xf32>
    %147 = arith.truncf %146 : vector<2x128xf32> to vector<2x128xbf16>
    %c14_66 = arith.constant 14 : index
    %c0_67 = arith.constant 0 : index
    %148 = vector.load %arg4[%c14_66, %c0_67] : memref<16x128xbf16, #tpu.memory_space<vmem>>, vector<2x128xbf16>
    tpu.vector_store %arg4[%c14_66, %c0_67], %147 {strides = array<i32>} : memref<16x128xbf16, #tpu.memory_space<vmem>>, vector<2x128xbf16>,
    return
  }
  func.func @transform_0(%arg0: i32) -> (i32, i32) {
    %c0_i32 = arith.constant 0 : i32
    %c0_i32_0 = arith.constant 0 : i32
    %c0_i32_1 = arith.constant 0 : i32
    return %c0_i32, %c0_i32_0 : i32, i32
  }
  func.func @transform_1(%arg0: i32) -> (i32, i32) {
    %c0_i32 = arith.constant 0 : i32
    %c0_i32_0 = arith.constant 0 : i32
    return %c0_i32, %arg0 : i32, i32
  }
  func.func @transform_2(%arg0: i32) -> (i32, i32) {
    %c0_i32 = arith.constant 0 : i32
    %c0_i32_0 = arith.constant 0 : i32
    return %c0_i32, %arg0 : i32, i32
  }
  func.func @transform_3(%arg0: i32) -> (i32, i32) {
    %c0_i32 = arith.constant 0 : i32
    %c0_i32_0 = arith.constant 0 : i32
    return %c0_i32, %arg0 : i32, i32
  }
}

</mosaic_0001>

<bundles_post_ra>
// kernel: tpu_custom_call.1
= control target key start
LH: loop header
LB: loop body
LE: loop exit
PB: predicated region body
PF: predicated region fallthrough
CT: control target
= control target key end

     0   :  { %8 = vsyncpa [#allocation4], 0  ;;  %s596_s0 = inlined_call_operand.hbm [shape: bf16[16,128], index: 0, kind: input, shape index: {}]   ;;  %s597_s1 = inlined_call_operand.hbm [shape: bf16[128,128], index: 1, kind: input, shape index: {}]   ;;  %s598_s2 = inlined_call_operand.hbm [shape: f32[8,128], index: 2, kind: input, shape index: {}]   ;;  %s599_s3 = inlined_call_operand.hbm [shape: bf16[16,128], index: 3, kind: output, shape index: {}]  }
   0x1   :  { %9 = vsyncpa [#allocation7], 0 }
   0x2   :  { %10 = vsyncpa [#allocation5], 0  ;;  %s510_s12 = smov [#allocation6]   ;;  %s511_s14 = smov [#allocation3]  }
   0x3   :  { %s28_s13 = sshll.u32 %s510_s12, 4  ;;  %s16_s15 = sshll.u32 %s511_s14, 4  ;;  %s29_s13 = int_to_ptr.vmem [resolvable:$true] %s28_s13  ;;  %s17_s15 = int_to_ptr.vmem [resolvable:$true] %s16_s15 }
   0x4   :  { %s432_s16 = scalar_lea.vmem %s29_s13, 1024  ;;  %p437_p1 = scmp.lt.s32.totalorder %s29_s13, %s29_s13 }
   0x5   :  { %p433_p0 = scmp.ne.s32.totalorder %s29_s13, %s432_s16  ;;  %p438_p2 = scmp.lt.s32.totalorder %s432_s16, %s432_s16 }
   0x7   :  { %p439_p3 = por %p438_p2, %p437_p1 }
   0x9   :  { %p440_p4 = pnand %p439_p3, %p433_p0 }
   0xb   :  { %443 = shalt.err (!%p440_p4)
}
   0xc   :  { %s512_s17 = smov 64   ;;  %s513_s18 = smov 4  }
   0xd   :  { %34 = dma.hbm_to_vmem [thread:$0]  %s597_s1, 1024, %s29_s13, [#allocation7], %s512_s17, %s512_s17, %s513_s18  }
   0xe   :  { %s452_s21 = scalar_lea.vmem %s17_s15, 128  ;;  %p457_p6 = scmp.lt.s32.totalorder %s17_s15, %s17_s15 }
   0xf   :  { %p453_p5 = scmp.ne.s32.totalorder %s17_s15, %s452_s21  ;;  %p458_p7 = scmp.lt.s32.totalorder %s452_s21, %s452_s21 }
  0x11   :  { %p459_p8 = por %p458_p7, %p457_p6 }
  0x13   :  { %p460_p9 = pnand %p459_p8, %p453_p5 }
  0x15   :  { %463 = shalt.err (!%p460_p9)
}
  0x16   :  { %22 = dma.hbm_to_vmem [thread:$0]  %s596_s0, 128, %s17_s15, [#allocation4], %s512_s17, %s512_s17, %s513_s18  }
  0x17   :  { %s514_s24 = smov [#allocation8]  }
  0x18   :  { %s41_s25 = sshll.u32 %s514_s24, 4  ;;  %s42_s25 = int_to_ptr.vmem [resolvable:$true] %s41_s25 }
  0x19   :  { %s472_s26 = scalar_lea.vmem %s42_s25, 128  ;;  %p477_p11 = scmp.lt.s32.totalorder %s42_s25, %s42_s25 }
  0x1a   :  { %p473_p10 = scmp.ne.s32.totalorder %s42_s25, %s472_s26  ;;  %p478_p12 = scmp.lt.s32.totalorder %s472_s26, %s472_s26 }
  0x1c   :  { %p479_p13 = por %p478_p12, %p477_p11 }
  0x1e   :  { %p480_p0 = pnand %p479_p13, %p473_p10 }
  0x20   :  { %483 = shalt.err (!%p480_p0)
}
  0x21   :  { %44 = dma.hbm_to_vmem [thread:$0]  %s598_s2, 128, %s42_s25, [#allocation7]  }
  0x22   :  { %504 = dma.done.wait [#allocation4], 128  }
  0x23   :  { %505 = vsyncadd [#allocation4], 4294967168 }
  0x24   :  { %506 = dma.done.wait [#allocation7], 1152  }
  0x25   :  { %507 = vsyncadd [#allocation7], 4294966144  ;;  %v515_v0 = vmov 0.0   ;;  %vm516_vm0 = vmmov 0   ;;  %v413_v1 = vld [vmem:[#allocation6 + $0x38] sm:$0xff]   ;;  %v414_v2 = vld [vmem:[#allocation6 + $0x30] sm:$0xff]   ;;  %v205_v39 = vlaneseq }
  0x26   :  { %385 = vmatprep.subr.bf16.mxu0 %v515_v0  ;;  %401 = vmatprep.mubr.msk.bf16.mxu0 %vm516_vm0, %v515_v0  ;;  %v415_v3 = vld [vmem:[#allocation6 + $0x28] sm:$0xff]   ;;  %v416_v4 = vld [vmem:[#allocation6 + $0x20] sm:$0xff]   ;;  %v417_v5 = vld [vmem:[#allocation6 + $0x18] sm:$0xff]   ;;  %s517_s0 = smov [#allocation9]  }
  0x27   :  { %386 = vmatpush3.bf16.msra.mxu0 %v413_v1  ;;  %v418_v6 = vld [vmem:[#allocation6 + $0x10] sm:$0xff]   ;;  %v419_v7 = vld [vmem:[#allocation6 + $0x8] sm:$0xff]   ;;  %v420_v8 = vld [vmem:[#allocation6] sm:$0xff]   ;;  %v206_v40 = vshrl.u32 %v205_v39, 7  ;;  %s334_s2 = sshll.u32 %s517_s0, 4  ;;  %s335_s2 = int_to_ptr.vmem [resolvable:$true] %s334_s2 }
  0x28   :  { %387 = vmatprep.subr.bf16.mxu0 %v515_v0  ;;  %v421_v9 = vld [vmem:[#allocation3] sm:$0xff]   ;;  %v198_v41 = vld [vmem:[#allocation8] sm:$0x1]  ;;  %v199_v45 = vld [vmem:[#allocation8 + $0x1] sm:$0x1]  ;;  %s484_s28 = scalar_lea.vmem %s335_s2, 128  ;;  %p489_p2 = scmp.lt.s32.totalorder %s335_s2, %s335_s2 }
  0x29   :  { %v207_v42 = vsub.s32 0, %v206_v40  ;;  %p485_p1 = scmp.ne.s32.totalorder %s335_s2, %s484_s28  ;;  %p490_p3 = scmp.lt.s32.totalorder %s484_s28, %s484_s28 }
  0x2b   :  { %388 = vmatpush3.bf16.msra.mxu0 %v414_v2  ;;  %p491_p4 = por %p490_p3, %p489_p2 }
  0x2c   :  { %389 = vmatprep.subr.bf16.mxu0 %v515_v0 }
  0x2d   :  { %p492_p5 = pnand %p491_p4, %p485_p1 }
  0x2f   :  { %390 = vmatpush3.bf16.msra.mxu0 %v415_v3 }
  0x30   :  { %391 = vmatprep.subr.bf16.mxu0 %v515_v0 }
  0x33   :  { %392 = vmatpush3.bf16.msra.mxu0 %v416_v4 }
  0x34   :  { %393 = vmatprep.subr.bf16.mxu0 %v515_v0 }
  0x37   :  { %394 = vmatpush3.bf16.msra.mxu0 %v417_v5 }
  0x38   :  { %395 = vmatprep.subr.bf16.mxu0 %v515_v0 }
  0x3b   :  { %396 = vmatpush3.bf16.msra.mxu0 %v418_v6 }
  0x3c   :  { %397 = vmatprep.subr.bf16.mxu0 %v515_v0 }
  0x3f   :  { %398 = vmatpush3.bf16.msra.mxu0 %v419_v7 }
  0x40   :  { %399 = vmatprep.subr.bf16.mxu0 %v515_v0 }
  0x43   :  { %400 = vmatpush3.bf16.msra.mxu0 %v420_v8 }
  0x46   :  { %402 = vmatmul.mubr.bf16.vlgmr.msra.gmra.mxu0 %v421_v9 }
 0x106   :  { %v161_v10 = vpop.f32.mrf.mxu0 }
 0x107   :  { %168 = vst [vmem:[#allocation2] sm:$0xff] %v161_v10 }
 0x108   :  { %v403_v11 = vpop.f32.mrf.mxu0 }
 0x10a   :  { %v164_v12 = vpop.f32.mrf.mxu0 }
 0x10b   :  { %169 = vst [vmem:[#allocation2 + $0x8] sm:$0xff] %v164_v12  ;;  %v170_v13 = vadd.f32 %v164_v12, %v161_v10 }
 0x10c   :  { %v404_v14 = vpop.f32.mrf.mxu0 }
 0x10d   :  { %v171_v15 = vrot.slane %v170_v13, 4 }
 0x10e   :  { %v213_v49 = vld [vmem:[#allocation2] sm:$0x3]  ;;  %v223_v53 = vld [vmem:[#allocation2 + $0x2] sm:$0x3]  ;;  %v239_v61 = vld [vmem:[#allocation2 + $0x4] sm:$0x3] }
 0x10f   :  { %v172_v16 = vadd.f32 %v171_v15, %v170_v13  ;;  %v255_v7 = vld [vmem:[#allocation2 + $0x6] sm:$0x3] }
 0x111   :  { %v173_v17 = vrot.slane %v172_v16, 2 }
 0x113   :  { %v174_v18 = vadd.f32 %v173_v17, %v172_v16  ;;  %v271_v16 = vld [vmem:[#allocation2 + $0x8] sm:$0x3] }
 0x115   :  { %v175_v19 = vrot.slane %v174_v18, 1 }
 0x117   :  { %v176_v20 = vadd.f32 %v175_v19, %v174_v18 }
 0x119   :  { %v178_v21 = vmul.f32 0.0625, %v176_v20 }
 0x11b   :  { %v181_v22 = vsub.f32 %v161_v10, %v178_v21  ;;  %v182_v23 = vsub.f32 %v164_v12, %v178_v21  ;;  %v193_v31 = vmul.f32 %v178_v21, %v178_v21 }
 0x11d   :  { %v183_v24 = vmul.f32 %v181_v22, %v181_v22  ;;  %v184_v25 = vmul.f32 %v182_v23, %v182_v23  ;;  %v194_v34 = vmul.f32 0.0, %v193_v31 }
 0x11f   :  { %v185_v26 = vadd.f32 %v184_v25, %v183_v24  ;;  %v282_v25 = vld [vmem:[#allocation2 + $0xa] sm:$0x3] }
 0x121   :  { %v186_v27 = vrot.slane %v185_v26, 4 }
 0x123   :  { %v187_v28 = vadd.f32 %v186_v27, %v185_v26 }
 0x125   :  { %v188_v29 = vrot.slane %v187_v28, 2 }
 0x127   :  { %v189_v30 = vadd.f32 %v188_v29, %v187_v28 }
 0x129   :  { %v190_v32 = vrot.slane %v189_v30, 1 }
 0x12b   :  { %v191_v33 = vadd.f32 %v190_v32, %v189_v30 }
 0x12d   :  { %v195_v35 = vsub.f32 %v191_v33, %v194_v34  ;;  %v298_v33 = vld [vmem:[#allocation2 + $0xc] sm:$0x3] }
 0x12f   :  { %v196_v36 = vmul.f32 0.0625, %v195_v35 }
 0x131   :  { %v197_v37 = vmax.f32 %v196_v36, 0.0 }
 0x133   :  { %v200_v38 = vadd.f32 1e-05, %v197_v37 }
 0x135   :  { %422 = vrsqrt.f32 %v200_v38 }
 0x142   :  { %v423_v43 = vpop.eup %422 }
 0x143   :  { %v202_v44 = vmul.f32 %v423_v43, %v198_v41 }
 0x145   :  { %v203_v46 = vmul.f32 %v202_v44, %v178_v21  ;;  %v562_v47 = vrot.slane %v202_v44, %v207_v42 }
 0x147   :  { %v204_v48 = vsub.f32 %v199_v45, %v203_v46  ;;  %v214_v51 = vmul.f32 %v213_v49, %v562_v47  ;;  %v224_v54 = vmul.f32 %v223_v53, %v562_v47  ;;  %v240_v62 = vmul.f32 %v239_v61, %v562_v47 }
 0x148   :  { %v256_v8 = vmul.f32 %v255_v7, %v562_v47  ;;  %v272_v17 = vmul.f32 %v271_v16, %v562_v47  ;;  %v283_v26 = vmul.f32 %v282_v25, %v562_v47  ;;  %v299_v34 = vmul.f32 %v298_v33, %v562_v47 }
 0x149   :  { %v564_v50 = vrot.slane %v204_v48, %v207_v42  ;;  %v314_v42 = vld [vmem:[#allocation2 + $0xe] sm:$0x3] }
 0x14a   :  { %v315_v43 = vmul.f32 %v314_v42, %v562_v47 }
 0x14b   :  { %v215_v52 = vadd.f32 %v214_v51, %v564_v50  ;;  %v225_v58 = vadd.f32 %v224_v54, %v564_v50  ;;  %v241_v3 = vadd.f32 %v240_v62, %v564_v50  ;;  %v257_v12 = vadd.f32 %v256_v8, %v564_v50 }
 0x14c   :  { %v273_v21 = vadd.f32 %v272_v17, %v564_v50  ;;  %v284_v30 = vadd.f32 %v283_v26, %v564_v50  ;;  %v300_v38 = vadd.f32 %v299_v34, %v564_v50  ;;  %v316_v48 = vadd.f32 %v315_v43, %v564_v50 }
 0x14d   :  { %vm217_vm1 = vcmp.ge.f32.partialorder %v215_v52, 0.5 }
 0x14e   :  { %v218_v55 = vsel %vm217_vm1, 0.0, %v215_v52  ;;  %v356_v56 = vsel %vm217_vm1, 1.0, %v515_v0 }
 0x14f   :  { %v221_v57 = vpack.c.bf16 %v356_v56, %v356_v56  ;;  %v226_v59 = vmul.f32 0.2, %v218_v55 }
 0x151   :  { %222 = vst [vmem:[#allocation9] sm:$0x1] %v221_v57  ;;  %v227_v60 = vadd.f32 %v226_v59, %v225_v58 }
 0x153   :  { %vm228_vm2 = vcmp.ge.f32.partialorder %v227_v60, 0.5 }
 0x154   :  { %v229_v63 = vsel %vm228_vm2, 0.0, %v227_v60  ;;  %v357_v1 = vsel %vm228_vm2, 1.0, %v515_v0 }
 0x155   :  { %v370_v2 = vpack.c.bf16 %v357_v1, %v357_v1  ;;  %v242_v4 = vmul.f32 0.2, %v229_v63 }
 0x157   :  { %v236_v5 = vrot.slane %v370_v2, 7  ;;  %v243_v6 = vadd.f32 %v242_v4, %v241_v3 }
 0x159   :  { %238 = vst [vmem:[#allocation9] sm:$0x2] %v236_v5  ;;  %vm244_vm3 = vcmp.ge.f32.partialorder %v243_v6, 0.5 }
 0x15a   :  { %v245_v9 = vsel %vm244_vm3, 0.0, %v243_v6  ;;  %v359_v10 = vsel %vm244_vm3, 1.0, %v515_v0 }
 0x15b   :  { %v371_v11 = vpack.c.bf16 %v359_v10, %v359_v10  ;;  %v258_v13 = vmul.f32 0.2, %v245_v9 }
 0x15d   :  { %v252_v14 = vrot.slane %v371_v11, 6  ;;  %v259_v15 = vadd.f32 %v258_v13, %v257_v12 }
 0x15f   :  { %254 = vst [vmem:[#allocation9] sm:$0x4] %v252_v14  ;;  %vm260_vm4 = vcmp.ge.f32.partialorder %v259_v15, 0.5 }
 0x160   :  { %v261_v18 = vsel %vm260_vm4, 0.0, %v259_v15  ;;  %v361_v19 = vsel %vm260_vm4, 1.0, %v515_v0 }
 0x161   :  { %v372_v20 = vpack.c.bf16 %v361_v19, %v361_v19  ;;  %v274_v22 = vmul.f32 0.2, %v261_v18 }
 0x163   :  { %v268_v23 = vrot.slane %v372_v20, 5  ;;  %v275_v24 = vadd.f32 %v274_v22, %v273_v21 }
 0x165   :  { %270 = vst [vmem:[#allocation9] sm:$0x8] %v268_v23  ;;  %vm276_vm5 = vcmp.ge.f32.partialorder %v275_v24, 0.5 }
 0x166   :  { %v277_v27 = vsel %vm276_vm5, 0.0, %v275_v24  ;;  %v363_v28 = vsel %vm276_vm5, 1.0, %v515_v0 }
 0x167   :  { %v280_v29 = vpack.c.bf16 %v363_v28, %v363_v28  ;;  %v285_v31 = vmul.f32 0.2, %v277_v27 }
 0x169   :  { %281 = vst [vmem:[#allocation9 + $0x4] sm:$0x1] %v280_v29  ;;  %v286_v32 = vadd.f32 %v285_v31, %v284_v30 }
 0x16b   :  { %vm287_vm6 = vcmp.ge.f32.partialorder %v286_v32, 0.5 }
 0x16c   :  { %v288_v35 = vsel %vm287_vm6, 0.0, %v286_v32  ;;  %v364_v36 = vsel %vm287_vm6, 1.0, %v515_v0 }
 0x16d   :  { %v373_v37 = vpack.c.bf16 %v364_v36, %v364_v36  ;;  %v301_v39 = vmul.f32 0.2, %v288_v35 }
 0x16f   :  { %v295_v40 = vrot.slane %v373_v37, 7  ;;  %v302_v41 = vadd.f32 %v301_v39, %v300_v38 }
 0x171   :  { %297 = vst [vmem:[#allocation9 + $0x4] sm:$0x2] %v295_v40  ;;  %vm303_vm7 = vcmp.ge.f32.partialorder %v302_v41, 0.5 }
 0x172   :  { %v304_v44 = vsel %vm303_vm7, 0.0, %v302_v41  ;;  %v366_v45 = vsel %vm303_vm7, 1.0, %v515_v0 }
 0x173   :  { %v374_v46 = vpack.c.bf16 %v366_v45, %v366_v45  ;;  %v317_v49 = vmul.f32 0.2, %v304_v44 }
 0x175   :  { %v311_v51 = vrot.slane %v374_v46, 6  ;;  %v318_v52 = vadd.f32 %v317_v49, %v316_v48 }
 0x177   :  { %313 = vst [vmem:[#allocation9 + $0x4] sm:$0x4] %v311_v51  ;;  %vm319_vm8 = vcmp.ge.f32.partialorder %v318_v52, 0.5 }
 0x178   :  { %v368_v53 = vsel %vm319_vm8, 1.0, %v515_v0 }
 0x179   :  { %v375_v54 = vpack.c.bf16 %v368_v53, %v368_v53 }
 0x17b   :  { %v326_v55 = vrot.slane %v375_v54, 5 }
 0x17d   :  { %328 = vst [vmem:[#allocation9 + $0x4] sm:$0x8] %v326_v55 }
 0x17e   :  { %495 = shalt.err (!%p492_p5)
}
 0x17f   :  { %340 = dma.vmem_to_hbm [thread:$0]  %s335_s2, 128, %s599_s3, [#allocation5], %s512_s17, %s512_s17, %s513_s18  }
 0x180   :  { %508 = dma.done.wait [#allocation5], 128  }
 0x181   :  { %509 = vsyncadd [#allocation5], 4294967168 }
 0x182   :  { %344 = vsyncpa [#allocation4], 1 }
 0x183   :  { %345 = vsyncpa [#allocation7], 1 }
 0x184   :  { %346 = vsyncpa [#allocation5], 1 }

// kernel: tpu_custom_call.1
= control target key start
LH: loop header
LB: loop body
LE: loop exit
PB: predicated region body
PF: predicated region fallthrough
CT: control target
= control target key end

     0   :  { %8 = vsyncpa [#allocation4], 0  ;;  %s596_s0 = inlined_call_operand.hbm [shape: bf16[16,128], index: 0, kind: input, shape index: {}]   ;;  %s597_s1 = inlined_call_operand.hbm [shape: bf16[128,128], index: 1, kind: input, shape index: {}]   ;;  %s598_s2 = inlined_call_operand.hbm [shape: f32[8,128], index: 2, kind: input, shape index: {}]   ;;  %s599_s3 = inlined_call_operand.hbm [shape: bf16[16,128], index: 3, kind: output, shape index: {}]  }
   0x1   :  { %9 = vsyncpa [#allocation7], 0 }
   0x2   :  { %10 = vsyncpa [#allocation5], 0  ;;  %s510_s12 = smov [#allocation6]   ;;  %s511_s14 = smov [#allocation3]  }
   0x3   :  { %s28_s13 = sshll.u32 %s510_s12, 4  ;;  %s16_s15 = sshll.u32 %s511_s14, 4  ;;  %s29_s13 = int_to_ptr.vmem [resolvable:$true] %s28_s13  ;;  %s17_s15 = int_to_ptr.vmem [resolvable:$true] %s16_s15 }
   0x4   :  { %s432_s16 = scalar_lea.vmem %s29_s13, 1024  ;;  %p437_p1 = scmp.lt.s32.totalorder %s29_s13, %s29_s13 }
   0x5   :  { %p433_p0 = scmp.ne.s32.totalorder %s29_s13, %s432_s16  ;;  %p438_p2 = scmp.lt.s32.totalorder %s432_s16, %s432_s16 }
   0x7   :  { %p439_p3 = por %p438_p2, %p437_p1 }
   0x9   :  { %p440_p4 = pnand %p439_p3, %p433_p0 }
   0xb   :  { %443 = shalt.err (!%p440_p4)
}
   0xc   :  { %s512_s17 = smov 64   ;;  %s513_s18 = smov 4  }
   0xd   :  { %34 = dma.hbm_to_vmem [thread:$0]  %s597_s1, 1024, %s29_s13, [#allocation7], %s512_s17, %s512_s17, %s513_s18  }
   0xe   :  { %s452_s21 = scalar_lea.vmem %s17_s15, 128  ;;  %p457_p6 = scmp.lt.s32.totalorder %s17_s15, %s17_s15 }
   0xf   :  { %p453_p5 = scmp.ne.s32.totalorder %s17_s15, %s452_s21  ;;  %p458_p7 = scmp.lt.s32.totalorder %s452_s21, %s452_s21 }
  0x11   :  { %p459_p8 = por %p458_p7, %p457_p6 }
  0x13   :  { %p460_p9 = pnand %p459_p8, %p453_p5 }
  0x15   :  { %463 = shalt.err (!%p460_p9)
}
  0x16   :  { %22 = dma.hbm_to_vmem [thread:$0]  %s596_s0, 128, %s17_s15, [#allocation4], %s512_s17, %s512_s17, %s513_s18  }
  0x17   :  { %s514_s24 = smov [#allocation8]  }
  0x18   :  { %s41_s25 = sshll.u32 %s514_s24, 4  ;;  %s42_s25 = int_to_ptr.vmem [resolvable:$true] %s41_s25 }
  0x19   :  { %s472_s26 = scalar_lea.vmem %s42_s25, 128  ;;  %p477_p11 = scmp.lt.s32.totalorder %s42_s25, %s42_s25 }
  0x1a   :  { %p473_p10 = scmp.ne.s32.totalorder %s42_s25, %s472_s26  ;;  %p478_p12 = scmp.lt.s32.totalorder %s472_s26, %s472_s26 }
  0x1c   :  { %p479_p13 = por %p478_p12, %p477_p11 }
  0x1e   :  { %p480_p0 = pnand %p479_p13, %p473_p10 }
  0x20   :  { %483 = shalt.err (!%p480_p0)
}
  0x21   :  { %44 = dma.hbm_to_vmem [thread:$0]  %s598_s2, 128, %s42_s25, [#allocation7]  }
  0x22   :  { %504 = dma.done.wait [#allocation4], 128  }
  0x23   :  { %505 = vsyncadd [#allocation4], 4294967168 }
  0x24   :  { %506 = dma.done.wait [#allocation7], 1152  }
  0x25   :  { %507 = vsyncadd [#allocation7], 4294966144  ;;  %v515_v0 = vmov 0.0   ;;  %vm516_vm0 = vmmov 0   ;;  %v413_v1 = vld [vmem:[#allocation6 + $0x38] sm:$0xff]   ;;  %v414_v2 = vld [vmem:[#allocation6 + $0x30] sm:$0xff]   ;;  %v205_v39 = vlaneseq }
  0x26   :  { %385 = vmatprep.subr.bf16.mxu0 %v515_v0  ;;  %401 = vmatprep.mubr.msk.bf16.mxu0 %vm516_vm0, %v515_v0  ;;  %v415_v3 = vld [vmem:[#allocation6 + $0x28] sm:$0xff]   ;;  %v416_v4 = vld [vmem:[#allocation6 + $0x20] sm:$0xff]   ;;  %v417_v5 = vld [vmem:[#allocation6 + $0x18] sm:$0xff]   ;;  %s517_s0 = smov [#allocation9]  }
  0x27   :  { %386 = vmatpush3.bf16.msra.mxu0 %v413_v1  ;;  %v418_v6 = vld [vmem:[#allocation6 + $0x10] sm:$0xff]   ;;  %v419_v7 = vld [vmem:[#allocation6 + $0x8] sm:$0xff]   ;;  %v420_v8 = vld [vmem:[#allocation6] sm:$0xff]   ;;  %v206_v40 = vshrl.u32 %v205_v39, 7  ;;  %s334_s2 = sshll.u32 %s517_s0, 4  ;;  %s335_s2 = int_to_ptr.vmem [resolvable:$true] %s334_s2 }
  0x28   :  { %387 = vmatprep.subr.bf16.mxu0 %v515_v0  ;;  %v421_v9 = vld [vmem:[#allocation3] sm:$0xff]   ;;  %v198_v41 = vld [vmem:[#allocation8] sm:$0x1]  ;;  %v199_v45 = vld [vmem:[#allocation8 + $0x1] sm:$0x1]  ;;  %s484_s28 = scalar_lea.vmem %s335_s2, 128  ;;  %p489_p2 = scmp.lt.s32.totalorder %s335_s2, %s335_s2 }
  0x29   :  { %v207_v42 = vsub.s32 0, %v206_v40  ;;  %p485_p1 = scmp.ne.s32.totalorder %s335_s2, %s484_s28  ;;  %p490_p3 = scmp.lt.s32.totalorder %s484_s28, %s484_s28 }
  0x2b   :  { %388 = vmatpush3.bf16.msra.mxu0 %v414_v2  ;;  %p491_p4 = por %p490_p3, %p489_p2 }
  0x2c   :  { %389 = vmatprep.subr.bf16.mxu0 %v515_v0 }
  0x2d   :  { %p492_p5 = pnand %p491_p4, %p485_p1 }
  0x2f   :  { %390 = vmatpush3.bf16.msra.mxu0 %v415_v3 }
  0x30   :  { %391 = vmatprep.subr.bf16.mxu0 %v515_v0 }
  0x33   :  { %392 = vmatpush3.bf16.msra.mxu0 %v416_v4 }
  0x34   :  { %393 = vmatprep.subr.bf16.mxu0 %v515_v0 }
  0x37   :  { %394 = vmatpush3.bf16.msra.mxu0 %v417_v5 }
  0x38   :  { %395 = vmatprep.subr.bf16.mxu0 %v515_v0 }
  0x3b   :  { %396 = vmatpush3.bf16.msra.mxu0 %v418_v6 }
  0x3c   :  { %397 = vmatprep.subr.bf16.mxu0 %v515_v0 }
  0x3f   :  { %398 = vmatpush3.bf16.msra.mxu0 %v419_v7 }
  0x40   :  { %399 = vmatprep.subr.bf16.mxu0 %v515_v0 }
  0x43   :  { %400 = vmatpush3.bf16.msra.mxu0 %v420_v8 }
  0x46   :  { %402 = vmatmul.mubr.bf16.vlgmr.msra.gmra.mxu0 %v421_v9 }
 0x106   :  { %v161_v10 = vpop.f32.mrf.mxu0 }
 0x107   :  { %168 = vst [vmem:[#allocation2] sm:$0xff] %v161_v10 }
 0x108   :  { %v403_v11 = vpop.f32.mrf.mxu0 }
 0x10a   :  { %v164_v12 = vpop.f32.mrf.mxu0 }
 0x10b   :  { %169 = vst [vmem:[#allocation2 + $0x8] sm:$0xff] %v164_v12  ;;  %v170_v13 = vadd.f32 %v164_v12, %v161_v10 }
 0x10c   :  { %v404_v14 = vpop.f32.mrf.mxu0 }
 0x10d   :  { %v171_v15 = vrot.slane %v170_v13, 4 }
 0x10e   :  { %v213_v49 = vld [vmem:[#allocation2] sm:$0x3]  ;;  %v223_v53 = vld [vmem:[#allocation2 + $0x2] sm:$0x3]  ;;  %v239_v61 = vld [vmem:[#allocation2 + $0x4] sm:$0x3] }
 0x10f   :  { %v172_v16 = vadd.f32 %v171_v15, %v170_v13  ;;  %v255_v7 = vld [vmem:[#allocation2 + $0x6] sm:$0x3] }
 0x111   :  { %v173_v17 = vrot.slane %v172_v16, 2 }
 0x113   :  { %v174_v18 = vadd.f32 %v173_v17, %v172_v16  ;;  %v271_v16 = vld [vmem:[#allocation2 + $0x8] sm:$0x3] }
 0x115   :  { %v175_v19 = vrot.slane %v174_v18, 1 }
 0x117   :  { %v176_v20 = vadd.f32 %v175_v19, %v174_v18 }
 0x119   :  { %v178_v21 = vmul.f32 0.0625, %v176_v20 }
 0x11b   :  { %v181_v22 = vsub.f32 %v161_v10, %v178_v21  ;;  %v182_v23 = vsub.f32 %v164_v12, %v178_v21  ;;  %v193_v31 = vmul.f32 %v178_v21, %v178_v21 }
 0x11d   :  { %v183_v24 = vmul.f32 %v181_v22, %v181_v22  ;;  %v184_v25 = vmul.f32 %v182_v23, %v182_v23  ;;  %v194_v34 = vmul.f32 0.0, %v193_v31 }
 0x11f   :  { %v185_v26 = vadd.f32 %v184_v25, %v183_v24  ;;  %v282_v25 = vld [vmem:[#allocation2 + $0xa] sm:$0x3] }
 0x121   :  { %v186_v27 = vrot.slane %v185_v26, 4 }
 0x123   :  { %v187_v28 = vadd.f32 %v186_v27, %v185_v26 }
 0x125   :  { %v188_v29 = vrot.slane %v187_v28, 2 }
 0x127   :  { %v189_v30 = vadd.f32 %v188_v29, %v187_v28 }
 0x129   :  { %v190_v32 = vrot.slane %v189_v30, 1 }
 0x12b   :  { %v191_v33 = vadd.f32 %v190_v32, %v189_v30 }
 0x12d   :  { %v195_v35 = vsub.f32 %v191_v33, %v194_v34  ;;  %v298_v33 = vld [vmem:[#allocation2 + $0xc] sm:$0x3] }
 0x12f   :  { %v196_v36 = vmul.f32 0.0625, %v195_v35 }
 0x131   :  { %v197_v37 = vmax.f32 %v196_v36, 0.0 }
 0x133   :  { %v200_v38 = vadd.f32 1e-05, %v197_v37 }
 0x135   :  { %422 = vrsqrt.f32 %v200_v38 }
 0x142   :  { %v423_v43 = vpop.eup %422 }
 0x143   :  { %v202_v44 = vmul.f32 %v423_v43, %v198_v41 }
 0x145   :  { %v203_v46 = vmul.f32 %v202_v44, %v178_v21  ;;  %v562_v47 = vrot.slane %v202_v44, %v207_v42 }
 0x147   :  { %v204_v48 = vsub.f32 %v199_v45, %v203_v46  ;;  %v214_v51 = vmul.f32 %v213_v49, %v562_v47  ;;  %v224_v54 = vmul.f32 %v223_v53, %v562_v47  ;;  %v240_v62 = vmul.f32 %v239_v61, %v562_v47 }
 0x148   :  { %v256_v8 = vmul.f32 %v255_v7, %v562_v47  ;;  %v272_v17 = vmul.f32 %v271_v16, %v562_v47  ;;  %v283_v26 = vmul.f32 %v282_v25, %v562_v47  ;;  %v299_v34 = vmul.f32 %v298_v33, %v562_v47 }
 0x149   :  { %v564_v50 = vrot.slane %v204_v48, %v207_v42  ;;  %v314_v42 = vld [vmem:[#allocation2 + $0xe] sm:$0x3] }
 0x14a   :  { %v315_v43 = vmul.f32 %v314_v42, %v562_v47 }
 0x14b   :  { %v215_v52 = vadd.f32 %v214_v51, %v564_v50  ;;  %v225_v58 = vadd.f32 %v224_v54, %v564_v50  ;;  %v241_v3 = vadd.f32 %v240_v62, %v564_v50  ;;  %v257_v12 = vadd.f32 %v256_v8, %v564_v50 }
 0x14c   :  { %v273_v21 = vadd.f32 %v272_v17, %v564_v50  ;;  %v284_v30 = vadd.f32 %v283_v26, %v564_v50  ;;  %v300_v38 = vadd.f32 %v299_v34, %v564_v50  ;;  %v316_v48 = vadd.f32 %v315_v43, %v564_v50 }
 0x14d   :  { %vm217_vm1 = vcmp.ge.f32.partialorder %v215_v52, 0.5 }
 0x14e   :  { %v218_v55 = vsel %vm217_vm1, 0.0, %v215_v52  ;;  %v356_v56 = vsel %vm217_vm1, 1.0, %v515_v0 }
 0x14f   :  { %v221_v57 = vpack.c.bf16 %v356_v56, %v356_v56  ;;  %v226_v59 = vmul.f32 0.2, %v218_v55 }
 0x151   :  { %222 = vst [vmem:[#allocation9] sm:$0x1] %v221_v57  ;;  %v227_v60 = vadd.f32 %v226_v59, %v225_v58 }
 0x153   :  { %vm228_vm2 = vcmp.ge.f32.partialorder %v227_v60, 0.5 }
 0x154   :  { %v229_v63 = vsel %vm228_vm2, 0.0, %v227_v60  ;;  %v357_v1 = vsel %vm228_vm2, 1.0, %v515_v0 }
 0x155   :  { %v370_v2 = vpack.c.bf16 %v357_v1, %v357_v1  ;;  %v242_v4 = vmul.f32 0.2, %v229_v63 }
 0x157   :  { %v236_v5 = vrot.slane %v370_v2, 7  ;;  %v243_v6 = vadd.f32 %v242_v4, %v241_v3 }
 0x159   :  { %238 = vst [vmem:[#allocation9] sm:$0x2] %v236_v5  ;;  %vm244_vm3 = vcmp.ge.f32.partialorder %v243_v6, 0.5 }
 0x15a   :  { %v245_v9 = vsel %vm244_vm3, 0.0, %v243_v6  ;;  %v359_v10 = vsel %vm244_vm3, 1.0, %v515_v0 }
 0x15b   :  { %v371_v11 = vpack.c.bf16 %v359_v10, %v359_v10  ;;  %v258_v13 = vmul.f32 0.2, %v245_v9 }
 0x15d   :  { %v252_v14 = vrot.slane %v371_v11, 6  ;;  %v259_v15 = vadd.f32 %v258_v13, %v257_v12 }
 0x15f   :  { %254 = vst [vmem:[#allocation9] sm:$0x4] %v252_v14  ;;  %vm260_vm4 = vcmp.ge.f32.partialorder %v259_v15, 0.5 }
 0x160   :  { %v261_v18 = vsel %vm260_vm4, 0.0, %v259_v15  ;;  %v361_v19 = vsel %vm260_vm4, 1.0, %v515_v0 }
 0x161   :  { %v372_v20 = vpack.c.bf16 %v361_v19, %v361_v19  ;;  %v274_v22 = vmul.f32 0.2, %v261_v18 }
 0x163   :  { %v268_v23 = vrot.slane %v372_v20, 5  ;;  %v275_v24 = vadd.f32 %v274_v22, %v273_v21 }
 0x165   :  { %270 = vst [vmem:[#allocation9] sm:$0x8] %v268_v23  ;;  %vm276_vm5 = vcmp.ge.f32.partialorder %v275_v24, 0.5 }
 0x166   :  { %v277_v27 = vsel %vm276_vm5, 0.0, %v275_v24  ;;  %v363_v28 = vsel %vm276_vm5, 1.0, %v515_v0 }
 0x167   :  { %v280_v29 = vpack.c.bf16 %v363_v28, %v363_v28  ;;  %v285_v31 = vmul.f32 0.2, %v277_v27 }
 0x169   :  { %281 = vst [vmem:[#allocation9 + $0x4] sm:$0x1] %v280_v29  ;;  %v286_v32 = vadd.f32 %v285_v31, %v284_v30 }
 0x16b   :  { %vm287_vm6 = vcmp.ge.f32.partialorder %v286_v32, 0.5 }
 0x16c   :  { %v288_v35 = vsel %vm287_vm6, 0.0, %v286_v32  ;;  %v364_v36 = vsel %vm287_vm6, 1.0, %v515_v0 }
 0x16d   :  { %v373_v37 = vpack.c.bf16 %v364_v36, %v364_v36  ;;  %v301_v39 = vmul.f32 0.2, %v288_v35 }
 0x16f   :  { %v295_v40 = vrot.slane %v373_v37, 7  ;;  %v302_v41 = vadd.f32 %v301_v39, %v300_v38 }
 0x171   :  { %297 = vst [vmem:[#allocation9 + $0x4] sm:$0x2] %v295_v40  ;;  %vm303_vm7 = vcmp.ge.f32.partialorder %v302_v41, 0.5 }
 0x172   :  { %v304_v44 = vsel %vm303_vm7, 0.0, %v302_v41  ;;  %v366_v45 = vsel %vm303_vm7, 1.0, %v515_v0 }
 0x173   :  { %v374_v46 = vpack.c.bf16 %v366_v45, %v366_v45  ;;  %v317_v49 = vmul.f32 0.2, %v304_v44 }
 0x175   :  { %v311_v51 = vrot.slane %v374_v46, 6  ;;  %v318_v52 = vadd.f32 %v317_v49, %v316_v48 }
 0x177   :  { %313 = vst [vmem:[#allocation9 + $0x4] sm:$0x4] %v311_v51  ;;  %vm319_vm8 = vcmp.ge.f32.partialorder %v318_v52, 0.5 }
 0x178   :  { %v368_v53 = vsel %vm319_vm8, 1.0, %v515_v0 }
 0x179   :  { %v375_v54 = vpack.c.bf16 %v368_v53, %v368_v53 }
 0x17b   :  { %v326_v55 = vrot.slane %v375_v54, 5 }
 0x17d   :  { %328 = vst [vmem:[#allocation9 + $0x4] sm:$0x8] %v326_v55 }
 0x17e   :  { %495 = shalt.err (!%p492_p5)
}
 0x17f   :  { %340 = dma.vmem_to_hbm [thread:$0]  %s335_s2, 128, %s599_s3, [#allocation5], %s512_s17, %s512_s17, %s513_s18  }
 0x180   :  { %508 = dma.done.wait [#allocation5], 128  }
 0x181   :  { %509 = vsyncadd [#allocation5], 4294967168 }
 0x182   :  { %344 = vsyncpa [#allocation4], 1 }
 0x183   :  { %345 = vsyncpa [#allocation7], 1 }
 0x184   :  { %346 = vsyncpa [#allocation5], 1 }

</bundles_post_ra>
